<compile_context>
chip_gen: v5e
topology: v5e:2x2
jax: 0.10.0
libtpu: 0.0.40
codegen_flags: <defaults>
</compile_context>

<pallas_src>
import jax
import jax.numpy as jnp
from jax.experimental import pallas as pl
from jax.experimental.pallas import tpu as pltpu


NEG_SLOPE = 0.01  # nn.LeakyReLU default negative_slope


def _round_up(x, m):
    return ((x + m - 1) // m) * m


def _leaky_relu(v):
    return jnp.where(v > 0, v, NEG_SLOPE * v)


def lrpnet_kernel(x_ref,
                  w1_ref, b1_ref,
                  w2_ref, b2_ref,
                  w3_ref, b3_ref,
                  w4_ref, b4_ref,
                  out_ref, h1_ref, pw_ref, h2_ref):
    # Cast x to bf16 in-kernel (bf16 MXU path); accumulate / bias / LeakyReLU in f32.
    x = x_ref[...].astype(jnp.bfloat16)

    # hidden_one -> LeakyReLU -> (dropout1 = identity in eval)
    h1 = _leaky_relu(
        jnp.dot(x, w1_ref[...], preferred_element_type=jnp.float32) + b1_ref[...])

    # pathway_layer -> LeakyReLU -> (dropout2 = identity in eval)
    pw = _leaky_relu(
        jnp.dot(h1.astype(jnp.bfloat16), w2_ref[...],
                preferred_element_type=jnp.float32) + b2_ref[...])

    # hidden_two -> LeakyReLU
    h2 = _leaky_relu(
        jnp.dot(pw.astype(jnp.bfloat16), w3_ref[...],
                preferred_element_type=jnp.float32) + b3_ref[...])

    # output_layer (no activation)
    out = jnp.dot(h2.astype(jnp.bfloat16), w4_ref[...],
                  preferred_element_type=jnp.float32) + b4_ref[...]

    out_ref[...] = out
    h1_ref[...] = h1
    pw_ref[...] = pw
    h2_ref[...] = h2


def _vmem_budget_bytes():
    """Generation-aware VMEM budget (~75% of physical, conservative fallback)."""
    try:
        cap = int(pltpu.get_tpu_info().vmem_capacity_bytes)
    except Exception:
        cap = 64 * 1024 * 1024  # v7x-sized fallback (safe everywhere)
    return min(cap * 3 // 4, 100 * 1024 * 1024)


def _choose_tile_b(batch, in_dim, total_out, resident_bytes, vmem_budget):
    """Largest batch tile that fits the VMEM budget, while keeping >= 8 grid
    steps when the batch allows (2 TCs on v7x * >= 4 pipelined steps each)."""
    # Rough per-row VMEM upper bound: double-buffered f32 x block, four
    # double-buffered f32 output blocks, f32 intermediates + bf16 matmul copies.
    per_row = (2 * 4 * in_dim          # x block, 2 buffers
               + 2 * 4 * total_out     # output blocks, 2 buffers
               + 4 * total_out         # f32 intermediates
               + 2 * (in_dim + total_out))  # bf16 copies
    avail = max(vmem_budget - 2 * resident_bytes, 1 << 20)
    cap = max(8, min(4096, (avail // per_row) // 8 * 8))
    n_tiles = max(1, min(8, pl.cdiv(batch, 8)))
    tile_b = _round_up(pl.cdiv(batch, n_tiles), 8)
    return int(min(tile_b, cap))


@jax.jit
def lrpnet_forward(x, params):
    """Fused LRPNet forward.

    Returns (x_output, x_hidden_one, x_pathway, x_hidden_two), matching the
    PyTorch LRPNet.forward return order.
    """
    w1, b1, w2, b2, w3, b3, w4, b4 = params
    batch, in_dim = x.shape
    h1_dim = w1.shape[1]
    pw_dim = w2.shape[1]
    h2_dim = w3.shape[1]
    out_dim = w4.shape[1]
    total_out = out_dim + h1_dim + pw_dim + h2_dim

    resident_bytes = (sum(int(w.size) * w.dtype.itemsize for w in (w1, w2, w3, w4))
                      + sum(int(b.size) * b.dtype.itemsize for b in (b1, b2, b3, b4)))
    vmem_budget = _vmem_budget_bytes()
    tile_b = _choose_tile_b(batch, in_dim, total_out, resident_bytes, vmem_budget)
    grid = (pl.cdiv(batch, tile_b),)

    def row_spec(d):
        return pl.BlockSpec((tile_b, d), lambda i: (i, 0))

    def const_spec(a):
        return pl.BlockSpec(a.shape, lambda i: (0, 0))

    in_specs = [row_spec(in_dim),
                const_spec(w1), const_spec(b1),
                const_spec(w2), const_spec(b2),
                const_spec(w3), const_spec(b3),
                const_spec(w4), const_spec(b4)]
    out_specs = (row_spec(out_dim), row_spec(h1_dim),
                 row_spec(pw_dim), row_spec(h2_dim))
    out_shape = (jax.ShapeDtypeStruct((batch, out_dim), jnp.float32),
                 jax.ShapeDtypeStruct((batch, h1_dim), jnp.float32),
                 jax.ShapeDtypeStruct((batch, pw_dim), jnp.float32),
                 jax.ShapeDtypeStruct((batch, h2_dim), jnp.float32))

    flops = 2 * batch * (in_dim * h1_dim + h1_dim * pw_dim
                         + pw_dim * h2_dim + h2_dim * out_dim)
    bytes_accessed = (batch * in_dim * 4          # x (f32, read once)
                      + resident_bytes            # weights (bf16) + biases (f32)
                      + batch * total_out * 4)    # four f32 outputs

    return pl.pallas_call(
        lrpnet_kernel,
        out_shape=out_shape,
        grid=grid,
        in_specs=in_specs,
        out_specs=out_specs,
        compiler_params=pltpu.CompilerParams(
            dimension_semantics=("parallel",),      # megacore sharding on v7x
            vmem_limit_bytes=int(vmem_budget),
        ),
        cost_estimate=pl.CostEstimate(
            flops=flops, transcendentals=0, bytes_accessed=bytes_accessed),
    )(x, w1, b1, w2, b2, w3, b3, w4, b4)


def make_params(key, input_dim, hidden_one_dim, pathway_dim, hidden_two_dim,
                output_dim, input_to_h1_masking, h1_to_pathway_masking):
    """Parameter init mirroring the nn.Linear shapes + EXPNet sparsity masks.

    PyTorch stores Linear weight as (out, in); EXPNet applies weight *= mask.T
    with mask of shape (in, out). We build (out, in) f32 weights, apply the
    transposed masks, transpose to (in, out) for direct matmul in the kernel,
    and cast weights to bf16 (matmul operands). Biases stay f32 as (1, out).
    """
    keys = jax.random.split(key, 8)

    def linear(kw, kb, fan_in, fan_out):
        bound = 1.0 / jnp.sqrt(fan_in)
        w = jax.random.uniform(kw, (fan_out, fan_in), jnp.float32, -bound, bound)
        b = jax.random.uniform(kb, (1, fan_out), jnp.float32, -bound, bound)
        return w, b

    w1, b1 = linear(keys[0], keys[1], input_dim, hidden_one_dim)
    w2, b2 = linear(keys[2], keys[3], hidden_one_dim, pathway_dim)
    w3, b3 = linear(keys[4], keys[5], pathway_dim, hidden_two_dim)
    w4, b4 = linear(keys[6], keys[7], hidden_two_dim, output_dim)

    # Sparsity masks exactly as in EXPNet.__init__ (weight *= mask.T).
    w1 = w1 * input_to_h1_masking.T          # (h1, in) * (h1, in)
    w2 = w2 * h1_to_pathway_masking.T        # (pw, h1) * (pw, h1)

    to_bf = lambda w: w.T.astype(jnp.bfloat16)   # (in, out) bf16 matmul operand
    return (to_bf(w1), b1, to_bf(w2), b2, to_bf(w3), b3, to_bf(w4), b4)


if __name__ == "__main__":
    # Small, forward-consistent shapes.
    batch = 8
    input_dim = 64
    hidden_one_dim = 32
    pathway_dim = 16
    hidden_two_dim = 32
    output_dim = 4

    key = jax.random.PRNGKey(0)
    k_x, k_m1, k_m2, k_p = jax.random.split(key, 4)

    # Deterministic binary sparsity masks, shape (in, out) as the module expects.
    input_to_h1_masking = (
        jax.random.uniform(k_m1, (input_dim, hidden_one_dim)) > 0.5
    ).astype(jnp.float32)
    h1_to_pathway_masking = (
        jax.random.uniform(k_m2, (hidden_one_dim, pathway_dim)) > 0.5
    ).astype(jnp.float32)

    params = make_params(k_p, input_dim, hidden_one_dim, pathway_dim,
                         hidden_two_dim, output_dim,
                         input_to_h1_masking, h1_to_pathway_masking)

    x = jax.random.normal(k_x, (batch, input_dim), jnp.float32)

    outs = lrpnet_forward(x, params)
    outs = jax.block_until_ready(outs)

    # Plain-JAX reference with the same precision structure (bf16 matmul
    # operands, f32 accumulation / bias / LeakyReLU).
    w1, b1, w2, b2, w3, b3, w4, b4 = params
    lrelu = lambda v: jnp.where(v > 0, v, NEG_SLOPE * v)

    def layer(a, w, b):
        return jnp.dot(a.astype(jnp.bfloat16), w,
                       preferred_element_type=jnp.float32) + b

    h1_ref = lrelu(layer(x, w1, b1))
    pw_ref = lrelu(layer(h1_ref, w2, b2))
    h2_ref = lrelu(layer(pw_ref, w3, b3))
    out_ref = layer(h2_ref, w4, b4)

    for got, want in zip(outs, (out_ref, h1_ref, pw_ref, h2_ref)):
        assert got.shape == want.shape, (got.shape, want.shape)
        assert jnp.allclose(got, want, atol=2e-2, rtol=2e-2)

    print("KERNEL_OK")
</pallas_src>

<mosaic_0001>
module attributes {stable_mosaic.version = 11 : i64} {
  func.func @lrpnet_kernel(%arg0: i32, %arg1: memref<8x64xf32, #tpu.memory_space<vmem>>, %arg2: memref<64x32xbf16, #tpu.memory_space<vmem>>, %arg3: memref<1x32xf32, #tpu.memory_space<vmem>>, %arg4: memref<32x16xbf16, #tpu.memory_space<vmem>>, %arg5: memref<1x16xf32, #tpu.memory_space<vmem>>, %arg6: memref<16x32xbf16, #tpu.memory_space<vmem>>, %arg7: memref<1x32xf32, #tpu.memory_space<vmem>>, %arg8: memref<32x4xbf16, #tpu.memory_space<vmem>>, %arg9: memref<1x4xf32, #tpu.memory_space<vmem>>, %arg10: memref<8x4xf32, #tpu.memory_space<vmem>>, %arg11: memref<8x32xf32, #tpu.memory_space<vmem>>, %arg12: memref<8x16xf32, #tpu.memory_space<vmem>>, %arg13: memref<8x32xf32, #tpu.memory_space<vmem>>) attributes {dimension_semantics = [#tpu.dimension_semantics<parallel>], iteration_bounds = array<i64: 1>, scalar_prefetch = 0 : i64, scratch_operands = 0 : i64, tpu.core_type = #tpu.core_type<tc>, window_params = [{transform_indices = @transform_0, window_bounds = array<i64: 8, 64>}, {pipeline_mode = #tpu.pipeline_mode<synchronous>, transform_indices = @transform_1, window_bounds = array<i64: 64, 32>}, {pipeline_mode = #tpu.pipeline_mode<synchronous>, transform_indices = @transform_2, window_bounds = array<i64: 1, 32>}, {pipeline_mode = #tpu.pipeline_mode<synchronous>, transform_indices = @transform_3, window_bounds = array<i64: 32, 16>}, {pipeline_mode = #tpu.pipeline_mode<synchronous>, transform_indices = @transform_4, window_bounds = array<i64: 1, 16>}, {pipeline_mode = #tpu.pipeline_mode<synchronous>, transform_indices = @transform_5, window_bounds = array<i64: 16, 32>}, {pipeline_mode = #tpu.pipeline_mode<synchronous>, transform_indices = @transform_6, window_bounds = array<i64: 1, 32>}, {pipeline_mode = #tpu.pipeline_mode<synchronous>, transform_indices = @transform_7, window_bounds = array<i64: 32, 4>}, {pipeline_mode = #tpu.pipeline_mode<synchronous>, transform_indices = @transform_8, window_bounds = array<i64: 1, 4>}, {transform_indices = @transform_9, window_bounds = array<i64: 8, 4>}, {transform_indices = @transform_10, window_bounds = array<i64: 8, 32>}, {transform_indices = @transform_11, window_bounds = array<i64: 8, 16>}, {transform_indices = @transform_12, window_bounds = array<i64: 8, 32>}]} {
    %c0 = arith.constant 0 : index
    %c0_0 = arith.constant 0 : index
    %0 = vector.load %arg1[%c0, %c0_0] : memref<8x64xf32, #tpu.memory_space<vmem>>, vector<8x64xf32>
    %1 = arith.truncf %0 : vector<8x64xf32> to vector<8x64xbf16>
    %c0_1 = arith.constant 0 : index
    %c0_2 = arith.constant 0 : index
    %2 = vector.load %arg2[%c0_1, %c0_2] : memref<64x32xbf16, #tpu.memory_space<vmem>>, vector<64x32xbf16>
    %cst = arith.constant dense<0.000000e+00> : vector<8x32xf32>
    %3 = tpu.matmul %1, %2, %cst {dimension_numbers = #tpu.dot_dimension_numbers<[1], [0], [0], [1], [0, 0, 1, 1], [], []>} : vector<8x64xbf16>, vector<64x32xbf16>, vector<8x32xf32> -> vector<8x32xf32>
    %c0_3 = arith.constant 0 : index
    %c0_4 = arith.constant 0 : index
    %4 = vector.load %arg3[%c0_3, %c0_4] : memref<1x32xf32, #tpu.memory_space<vmem>>, vector<1x32xf32>
    %5 = vector.broadcast %4 : vector<1x32xf32> to vector<8x32xf32>
    %6 = arith.addf %3, %5 : vector<8x32xf32>
    %cst_5 = arith.constant 0.000000e+00 : f32
    %7 = vector.broadcast %cst_5 : f32 to vector<8x32xf32>
    %8 = arith.cmpf ogt, %6, %7 : vector<8x32xf32>
    %cst_6 = arith.constant 0.00999999977 : f32
    %9 = vector.broadcast %cst_6 : f32 to vector<8x32xf32>
    %10 = arith.mulf %9, %6 : vector<8x32xf32>
    %11 = arith.select %8, %6, %10 : vector<8x32xi1>, vector<8x32xf32>
    %12 = arith.truncf %11 : vector<8x32xf32> to vector<8x32xbf16>
    %c0_7 = arith.constant 0 : index
    %c0_8 = arith.constant 0 : index
    %13 = vector.load %arg4[%c0_7, %c0_8] : memref<32x16xbf16, #tpu.memory_space<vmem>>, vector<32x16xbf16>
    %cst_9 = arith.constant dense<0.000000e+00> : vector<8x16xf32>
    %14 = tpu.matmul %12, %13, %cst_9 {dimension_numbers = #tpu.dot_dimension_numbers<[1], [0], [0], [1], [0, 0, 1, 1], [], []>} : vector<8x32xbf16>, vector<32x16xbf16>, vector<8x16xf32> -> vector<8x16xf32>
    %c0_10 = arith.constant 0 : index
    %c0_11 = arith.constant 0 : index
    %15 = vector.load %arg5[%c0_10, %c0_11] : memref<1x16xf32, #tpu.memory_space<vmem>>, vector<1x16xf32>
    %16 = vector.broadcast %15 : vector<1x16xf32> to vector<8x16xf32>
    %17 = arith.addf %14, %16 : vector<8x16xf32>
    %cst_12 = arith.constant 0.000000e+00 : f32
    %18 = vector.broadcast %cst_12 : f32 to vector<8x16xf32>
    %19 = arith.cmpf ogt, %17, %18 : vector<8x16xf32>
    %cst_13 = arith.constant 0.00999999977 : f32
    %20 = vector.broadcast %cst_13 : f32 to vector<8x16xf32>
    %21 = arith.mulf %20, %17 : vector<8x16xf32>
    %22 = arith.select %19, %17, %21 : vector<8x16xi1>, vector<8x16xf32>
    %23 = arith.truncf %22 : vector<8x16xf32> to vector<8x16xbf16>
    %c0_14 = arith.constant 0 : index
    %c0_15 = arith.constant 0 : index
    %24 = vector.load %arg6[%c0_14, %c0_15] : memref<16x32xbf16, #tpu.memory_space<vmem>>, vector<16x32xbf16>
    %cst_16 = arith.constant dense<0.000000e+00> : vector<8x32xf32>
    %25 = tpu.matmul %23, %24, %cst_16 {dimension_numbers = #tpu.dot_dimension_numbers<[1], [0], [0], [1], [0, 0, 1, 1], [], []>} : vector<8x16xbf16>, vector<16x32xbf16>, vector<8x32xf32> -> vector<8x32xf32>
    %c0_17 = arith.constant 0 : index
    %c0_18 = arith.constant 0 : index
    %26 = vector.load %arg7[%c0_17, %c0_18] : memref<1x32xf32, #tpu.memory_space<vmem>>, vector<1x32xf32>
    %27 = vector.broadcast %26 : vector<1x32xf32> to vector<8x32xf32>
    %28 = arith.addf %25, %27 : vector<8x32xf32>
    %cst_19 = arith.constant 0.000000e+00 : f32
    %29 = vector.broadcast %cst_19 : f32 to vector<8x32xf32>
    %30 = arith.cmpf ogt, %28, %29 : vector<8x32xf32>
    %cst_20 = arith.constant 0.00999999977 : f32
    %31 = vector.broadcast %cst_20 : f32 to vector<8x32xf32>
    %32 = arith.mulf %31, %28 : vector<8x32xf32>
    %33 = arith.select %30, %28, %32 : vector<8x32xi1>, vector<8x32xf32>
    %34 = arith.truncf %33 : vector<8x32xf32> to vector<8x32xbf16>
    %c0_21 = arith.constant 0 : index
    %c0_22 = arith.constant 0 : index
    %35 = vector.load %arg8[%c0_21, %c0_22] : memref<32x4xbf16, #tpu.memory_space<vmem>>, vector<32x4xbf16>
    %cst_23 = arith.constant dense<0.000000e+00> : vector<8x4xf32>
    %36 = tpu.matmul %34, %35, %cst_23 {dimension_numbers = #tpu.dot_dimension_numbers<[1], [0], [0], [1], [0, 0, 1, 1], [], []>} : vector<8x32xbf16>, vector<32x4xbf16>, vector<8x4xf32> -> vector<8x4xf32>
    %c0_24 = arith.constant 0 : index
    %c0_25 = arith.constant 0 : index
    %37 = vector.load %arg9[%c0_24, %c0_25] : memref<1x4xf32, #tpu.memory_space<vmem>>, vector<1x4xf32>
    %38 = vector.broadcast %37 : vector<1x4xf32> to vector<8x4xf32>
    %39 = arith.addf %36, %38 : vector<8x4xf32>
    %c0_26 = arith.constant 0 : index
    %c0_27 = arith.constant 0 : index
    %40 = vector.load %arg10[%c0_26, %c0_27] : memref<8x4xf32, #tpu.memory_space<vmem>>, vector<8x4xf32>
    tpu.vector_store %arg10[%c0_26, %c0_27], %39 {strides = array<i32>} : memref<8x4xf32, #tpu.memory_space<vmem>>, vector<8x4xf32>,
    %c0_28 = arith.constant 0 : index
    %c0_29 = arith.constant 0 : index
    %41 = vector.load %arg11[%c0_28, %c0_29] : memref<8x32xf32, #tpu.memory_space<vmem>>, vector<8x32xf32>
    tpu.vector_store %arg11[%c0_28, %c0_29], %11 {strides = array<i32>} : memref<8x32xf32, #tpu.memory_space<vmem>>, vector<8x32xf32>,
    %c0_30 = arith.constant 0 : index
    %c0_31 = arith.constant 0 : index
    %42 = vector.load %arg12[%c0_30, %c0_31] : memref<8x16xf32, #tpu.memory_space<vmem>>, vector<8x16xf32>
    tpu.vector_store %arg12[%c0_30, %c0_31], %22 {strides = array<i32>} : memref<8x16xf32, #tpu.memory_space<vmem>>, vector<8x16xf32>,
    %c0_32 = arith.constant 0 : index
    %c0_33 = arith.constant 0 : index
    %43 = vector.load %arg13[%c0_32, %c0_33] : memref<8x32xf32, #tpu.memory_space<vmem>>, vector<8x32xf32>
    tpu.vector_store %arg13[%c0_32, %c0_33], %33 {strides = array<i32>} : memref<8x32xf32, #tpu.memory_space<vmem>>, vector<8x32xf32>,
    return
  }
  func.func @transform_0(%arg0: i32) -> (i32, i32) {
    %c0_i32 = arith.constant 0 : i32
    %c0_i32_0 = arith.constant 0 : i32
    return %arg0, %c0_i32 : i32, i32
  }
  func.func @transform_1(%arg0: i32) -> (i32, i32) {
    %c0_i32 = arith.constant 0 : i32
    %c0_i32_0 = arith.constant 0 : i32
    %c0_i32_1 = arith.constant 0 : i32
    return %c0_i32, %c0_i32_0 : i32, i32
  }
  func.func @transform_2(%arg0: i32) -> (i32, i32) {
    %c0_i32 = arith.constant 0 : i32
    %c0_i32_0 = arith.constant 0 : i32
    %c0_i32_1 = arith.constant 0 : i32
    return %c0_i32, %c0_i32_0 : i32, i32
  }
  func.func @transform_3(%arg0: i32) -> (i32, i32) {
    %c0_i32 = arith.constant 0 : i32
    %c0_i32_0 = arith.constant 0 : i32
    %c0_i32_1 = arith.constant 0 : i32
    return %c0_i32, %c0_i32_0 : i32, i32
  }
  func.func @transform_4(%arg0: i32) -> (i32, i32) {
    %c0_i32 = arith.constant 0 : i32
    %c0_i32_0 = arith.constant 0 : i32
    %c0_i32_1 = arith.constant 0 : i32
    return %c0_i32, %c0_i32_0 : i32, i32
  }
  func.func @transform_5(%arg0: i32) -> (i32, i32) {
    %c0_i32 = arith.constant 0 : i32
    %c0_i32_0 = arith.constant 0 : i32
    %c0_i32_1 = arith.constant 0 : i32
    return %c0_i32, %c0_i32_0 : i32, i32
  }
  func.func @transform_6(%arg0: i32) -> (i32, i32) {
    %c0_i32 = arith.constant 0 : i32
    %c0_i32_0 = arith.constant 0 : i32
    %c0_i32_1 = arith.constant 0 : i32
    return %c0_i32, %c0_i32_0 : i32, i32
  }
  func.func @transform_7(%arg0: i32) -> (i32, i32) {
    %c0_i32 = arith.constant 0 : i32
    %c0_i32_0 = arith.constant 0 : i32
    %c0_i32_1 = arith.constant 0 : i32
    return %c0_i32, %c0_i32_0 : i32, i32
  }
  func.func @transform_8(%arg0: i32) -> (i32, i32) {
    %c0_i32 = arith.constant 0 : i32
    %c0_i32_0 = arith.constant 0 : i32
    %c0_i32_1 = arith.constant 0 : i32
    return %c0_i32, %c0_i32_0 : i32, i32
  }
  func.func @transform_9(%arg0: i32) -> (i32, i32) {
    %c0_i32 = arith.constant 0 : i32
    %c0_i32_0 = arith.constant 0 : i32
    return %arg0, %c0_i32 : i32, i32
  }
  func.func @transform_10(%arg0: i32) -> (i32, i32) {
    %c0_i32 = arith.constant 0 : i32
    %c0_i32_0 = arith.constant 0 : i32
    return %arg0, %c0_i32 : i32, i32
  }
  func.func @transform_11(%arg0: i32) -> (i32, i32) {
    %c0_i32 = arith.constant 0 : i32
    %c0_i32_0 = arith.constant 0 : i32
    return %arg0, %c0_i32 : i32, i32
  }
  func.func @transform_12(%arg0: i32) -> (i32, i32) {
    %c0_i32 = arith.constant 0 : i32
    %c0_i32_0 = arith.constant 0 : i32
    return %arg0, %c0_i32 : i32, i32
  }
}

</mosaic_0001>

<bundles_post_ra>
// kernel: lrpnet_forward.1
= control target key start
LH: loop header
LB: loop body
LE: loop exit
PB: predicated region body
PF: predicated region fallthrough
CT: control target
= control target key end

     0   :  { %18 = vsyncpa [#allocation3], 0  ;;  %s522_s0 = inlined_call_operand.vmem [shape: f32[8,64], index: 0, kind: input, shape index: {}]   ;;  %s523_s1 = inlined_call_operand.vmem [shape: bf16[64,32], index: 1, kind: input, shape index: {}]   ;;  %s524_s2 = inlined_call_operand.vmem [shape: f32[1,32], index: 2, kind: input, shape index: {}]   ;;  %s525_s3 = inlined_call_operand.vmem [shape: bf16[32,16], index: 3, kind: input, shape index: {}]   ;;  %s526_s4 = inlined_call_operand.vmem [shape: f32[1,16], index: 4, kind: input, shape index: {}]   ;;  %s527_s5 = inlined_call_operand.vmem [shape: bf16[16,32], index: 5, kind: input, shape index: {}]   ;;  %s528_s6 = inlined_call_operand.vmem [shape: f32[1,32], index: 6, kind: input, shape index: {}]   ;;  %s529_s7 = inlined_call_operand.vmem [shape: bf16[32,4], index: 7, kind: input, shape index: {}]   ;;  %s530_s8 = inlined_call_operand.vmem [shape: f32[1,4], index: 8, kind: input, shape index: {}]   ;;  %s531_s9 = inlined_call_operand.vmem [shape: f32[8,4], index: 9, kind: output, shape index: {0}]   ;;  %s532_s10 = inlined_call_operand.hbm [shape: f32[8,32], index: 10, kind: output, shape index: {1}]   ;;  %s533_s11 = inlined_call_operand.hbm [shape: f32[8,16], index: 11, kind: output, shape index: {2}]   ;;  %s534_s12 = inlined_call_operand.hbm [shape: f32[8,32], index: 12, kind: output, shape index: {3}]  }
   0x1   :  { %v307_v0 = vld [vmem:[%s523_s1 + $0x18] sm:$0xff]  ;;  %v306_v1 = vld [vmem:[%s523_s1 + $0x10] sm:$0xff] }
   0x2   :  { %85 = vmatpush.bf16.msra.mxu0 %v307_v0 }
   0x3   :  { %19 = vsyncpa [#allocation5], 0  ;;  %v305_v2 = vld [vmem:[%s523_s1 + $0x8] sm:$0xff]  ;;  %v304_v3 = vld [vmem:[%s523_s1] sm:$0xff]  ;;  %vm77_vm0 = vcmask 523264   ;;  %vm118_vm2 = vcmask 261120  }
   0x4   :  { %v39_v4 = vld [vmem:[%s522_s0] sm:$0xff]  ;;  %v309_v6 = vld [vmem:[%s525_s3 + $0x8] sm:$0xff]  ;;  %vm151_vm4 = vcmask 130048   ;;  %s396_s25 = smov [#allocation4]   ;;  %s222_s30 = sshll.u32 %s532_s10, 4  ;;  %vm208_vm6 = vcmask 31744   ;;  %s223_s30 = int_to_ptr.hbm [resolvable:$true] %s222_s30 }
   0x5   :  { %v40_v5 = vpack.c.bf16 %v39_v4, %v39_v4  ;;  %128 = vmatpush.bf16.msra.mxu1 %v309_v6  ;;  %v308_v7 = vld [vmem:[%s525_s3] sm:$0xff]  ;;  %v312_v23 = vld [vmem:[%s529_s7 + $0x8] sm:$0xff]  ;;  %s231_s26 = sshll.u32 %s396_s25, 4  ;;  %s244_s15 = sshll.u32 %s534_s12, 4  ;;  %s232_s26 = int_to_ptr.vmem [resolvable:$true] %s231_s26  ;;  %s245_s15 = int_to_ptr.hbm [resolvable:$true] %s244_s15 }
   0x6   :  { %86 = vmatpush.bf16.msra.mxu0 %v306_v1  ;;  %v316_v8 = vld [vmem:[%s524_s2] ss:$0 sm:$0xff]  ;;  %201 = vmatpush.bf16.msra.mxu3 %v312_v23  ;;  %s398_s16 = smov [#allocation6]  }
   0x7   :  { %v310_v15 = vld [vmem:[%s527_s5] sm:$0xff] }
   0x8   :  { %162 = vmatpush.bf16.msra.mxu2 %v310_v15  ;;  %v317_v16 = vld [vmem:[%s526_s4] ss:$0 sm:$0xff] }
   0x9   :  { %129 = vmatpush.bf16.msra.mxu1 %v308_v7  ;;  %v311_v24 = vld [vmem:[%s529_s7] sm:$0xff]  ;;  %s233_s7 = sshll.u32 %s533_s11, 4  ;;  %s242_s11 = sshll.u32 %s398_s16, 4  ;;  %s234_s7 = int_to_ptr.hbm [resolvable:$true] %s233_s7  ;;  %s243_s11 = int_to_ptr.vmem [resolvable:$true] %s242_s11 }
   0xa   :  { %87 = vmatpush.bf16.msra.mxu0 %v305_v2  ;;  %202 = vmatpush.bf16.msra.mxu3 %v311_v24  ;;  %v318_v25 = vld [vmem:[%s528_s6] ss:$0 sm:$0xff]  ;;  %s397_s6 = smov [#allocation2]  }
   0xb   :  { %s220_s27 = sshll.u32 %s397_s6, 4  ;;  %v319_v32 = vld [vmem:[%s530_s8] ss:$0 sm:$0xff]  ;;  %s221_s27 = int_to_ptr.vmem [resolvable:$true] %s220_s27 }
   0xe   :  { %88 = vmatpush.bf16.msra.mxu0 %v304_v3 }
  0x11   :  { %280 = vmatmul.msk.bf16.vlgmr.msra.gmra.mxu0 %vm77_vm0, %v40_v5 }
  0x8e   :  { %v90_v9 = vpop.f32.mrf.mxu0 }
  0x8f   :  { %v91_v10 = vadd.f32 %v316_v8, %v90_v9 }
  0x91   :  { %vm94_vm1 = vcmp.gt.f32.partialorder %v91_v10, 0.0  ;;  %v95_v11 = vmul.f32 0.01, %v91_v10 }
  0x93   :  { %v96_v12 = vsel %vm94_vm1, %v91_v10, %v95_v11 }
  0x94   :  { %v97_v13 = vpack.c.bf16 %v96_v12, %v96_v12  ;;  %210 = vst.msk [vmem:[#allocation2] sm:$0xff] %vm118_vm2, %v96_v12 }
  0x95   :  { %225 = dma.vmem_to_hbm [thread:$0]  %s221_s27, 128, %s223_s30, [#allocation3]  }
  0x96   :  { %v92_v14 = vpop.f32.mrf.mxu0  ;;  %289 = vmatmul.msk.bf16.vlgmr.msra.gmra.mxu1 %vm118_vm2, %v97_v13 }
 0x113   :  { %v131_v17 = vpop.f32.mrf.mxu1 }
 0x114   :  { %v132_v18 = vadd.f32 %v317_v16, %v131_v17 }
 0x116   :  { %vm135_vm3 = vcmp.gt.f32.partialorder %v132_v18, 0.0  ;;  %v136_v19 = vmul.f32 0.01, %v132_v18 }
 0x118   :  { %v137_v20 = vsel %vm135_vm3, %v132_v18, %v136_v19 }
 0x119   :  { %v138_v21 = vpack.c.bf16 %v137_v20, %v137_v20  ;;  %211 = vst.msk [vmem:[#allocation4] sm:$0xff] %vm151_vm4, %v137_v20 }
 0x11a   :  { %236 = dma.vmem_to_hbm [thread:$0]  %s232_s26, 128, %s234_s7, [#allocation5]  }
 0x11b   :  { %v133_v22 = vpop.f32.mrf.mxu1  ;;  %294 = vmatmul.msk.bf16.vlgmr.msra.gmra.mxu2 %vm151_vm4, %v138_v21 }
 0x19e   :  { %v164_v26 = vpop.f32.mrf.mxu2 }
 0x19f   :  { %v165_v27 = vadd.f32 %v318_v25, %v164_v26 }
 0x1a1   :  { %vm168_vm5 = vcmp.gt.f32.partialorder %v165_v27, 0.0  ;;  %v169_v28 = vmul.f32 0.01, %v165_v27 }
 0x1a3   :  { %v170_v29 = vsel %vm168_vm5, %v165_v27, %v169_v28 }
 0x1a4   :  { %v171_v30 = vpack.c.bf16 %v170_v29, %v170_v29  ;;  %212 = vst.msk [vmem:[#allocation6] sm:$0xff] %vm118_vm2, %v170_v29 }
 0x1a5   :  { %247 = dma.vmem_to_hbm [thread:$0]  %s243_s11, 128, %s245_s15, [#allocation5]  }
 0x1a6   :  { %v166_v31 = vpop.f32.mrf.mxu2  ;;  %303 = vmatmul.msk.bf16.vlgmr.msra.gmra.mxu3 %vm118_vm2, %v171_v30 }
 0x229   :  { %v204_v33 = vpop.f32.mrf.mxu3 }
 0x22a   :  { %v205_v34 = vadd.f32 %v319_v32, %v204_v33 }
 0x22c   :  { %209 = vst.msk [vmem:[%s531_s9] sm:$0xff] %vm208_vm6, %v205_v34 }
 0x231   :  { %v206_v35 = vpop.f32.mrf.mxu3 }
 0x232   :  { %392 = dma.done.wait [#allocation3], 128  }
 0x233   :  { %393 = vsyncadd [#allocation3], 4294967168 }
 0x234   :  { %394 = dma.done.wait [#allocation5], 256  }
 0x235   :  { %395 = vsyncadd [#allocation5], 4294967040 }
 0x236   :  { %262 = vsyncpa [#allocation3], 1 }
 0x237   :  { %263 = vsyncpa [#allocation5], 1 }

</bundles_post_ra>
